<compile_context>
chip_gen: v7x
topology: tpu7x:2x2x1
jax: 0.10.0
libtpu: 0.0.40
codegen_flags: <defaults>
</compile_context>

<pallas_src>
import numpy as np
import jax
import jax.numpy as jnp
from jax import lax
from jax.experimental import pallas as pl
from jax.experimental.pallas import tpu as pltpu


def _bellman_ford_kernel(src_ref, adj_ref, dist_ref, pred_ref, neg_ref,
                         prow_ref, pcol_ref):
    TI = dist_ref.shape[0]          # iterations handled by this grid step
    N = adj_ref.shape[0]
    INF = jnp.float32(jnp.inf)
    b = pl.program_id(0)

    adj = adj_ref[...]                                        # adj[u, v] (VMEM resident)

    lane_ids = lax.broadcasted_iota(jnp.int32, (1, N), 1)     # node id along lanes
    sub_ids = lax.broadcasted_iota(jnp.int32, (N, 1), 0)      # node id along sublanes
    u_idx = lax.broadcasted_iota(jnp.int32, (N, N), 0)        # u per (u, v) cell
    diag = u_idx == lax.broadcasted_iota(jnp.int32, (N, N), 1)  # hoisted, loop-invariant

    # Iteration 0: inf everywhere except the source node.
    @pl.when(b == 0)
    def _init():
        src = src_ref[0]
        row0 = jnp.where(lane_ids == src, jnp.float32(0.0), INF)   # (1, N)
        col0 = jnp.where(sub_ids == src, jnp.float32(0.0), INF)    # (N, 1)
        dist_ref[pl.ds(0, 1), :] = row0
        pred_ref[pl.ds(0, 1), :] = jnp.zeros((1, N), jnp.int32)
        prow_ref[...] = row0
        pcol_ref[...] = col0

    # Local iteration range inside this block of TI iterations.
    lo = jnp.where(b == 0, 1, 0)                    # skip iteration 0 in block 0
    hi = jnp.minimum(TI, N - b * TI)                # partial last block

    def body(j, carry):
        _, prev_col = carry                          # (N, 1): dist of previous iteration
        cand = prev_col + adj                        # cand[u, v] = dist[u, i-1] + adj[u, v]
        new_row = jnp.min(cand, axis=0, keepdims=True)             # (1, N), indexed by v
        # predecessor = smallest u achieving the min (exact-match tie semantics).
        arg_row = jnp.min(jnp.where(cand == new_row, u_idx, N),
                          axis=0, keepdims=True)                   # (1, N) int32
        improved = new_row < INF
        # Row -> column relayout of the carried distances via diagonal select +
        # lane reduce: avoids keeping a second adj^T copy and avoids an explicit
        # (1,N)->(N,1) vector transpose.
        new_col = jnp.min(jnp.where(diag, new_row, INF),
                          axis=1, keepdims=True)                   # (N, 1)
        dist_ref[pl.ds(j, 1), :] = new_row
        pred_ref[pl.ds(j, 1), :] = jnp.where(improved, arg_row, 0)
        return (new_row, new_col)

    last_row, last_col = lax.fori_loop(lo, hi, body,
                                       (prow_ref[...], pcol_ref[...]))
    prow_ref[...] = last_row          # carry distances into the next grid step
    pcol_ref[...] = last_col

    # negative cycle: exists (u, v) with dist[u, N-1] + adj[u, v] < dist[v, N-1]
    @pl.when(b == pl.num_programs(0) - 1)
    def _neg():
        viol = ((last_col + adj) < last_row).astype(jnp.int32)     # (N, N)
        neg_ref[...] = jnp.max(jnp.max(viol, axis=1, keepdims=True),
                               axis=0, keepdims=True)


def bellman_ford_layer(adj_matrix, source_node, *, block_iters=8):
    """JAX/Pallas equivalent of BellmanFordLayer(num_nodes).forward(adj, src)."""
    adj = jnp.asarray(adj_matrix, dtype=jnp.float32)
    N = adj.shape[0]
    TI = max(1, min(block_iters, N))
    num_blocks = pl.cdiv(N, TI)
    padded_iters = num_blocks * TI            # outputs padded to a whole number of blocks
    src = jnp.asarray([source_node], dtype=jnp.int32)

    # VMEM budget: resident adj (allow double buffering), streamed dist/pred blocks
    # (double buffered), in-kernel (N, N) temporaries, small scratch, + headroom.
    adj_bytes = N * N * 4
    blk_bytes = TI * N * 4
    est = 2 * adj_bytes + 4 * 2 * blk_bytes + 4 * adj_bytes + 8 * N * 4 + (1 << 16)
    vmem_limit = int(min(max(est * 5 // 4, 4 << 20), 127 << 20))

    grid_spec = pltpu.PrefetchScalarGridSpec(
        num_scalar_prefetch=1,
        grid=(num_blocks,),
        in_specs=[
            pl.BlockSpec((N, N), lambda b, s_ref: (0, 0)),     # adj stays resident
        ],
        out_specs=(
            pl.BlockSpec((TI, N), lambda b, s_ref: (b, 0)),    # dist_T, streamed
            pl.BlockSpec((TI, N), lambda b, s_ref: (b, 0)),    # pred_T, streamed
            pl.BlockSpec((1, 1), lambda b, s_ref: (0, 0)),     # negative-cycle flag
        ),
        scratch_shapes=[
            pltpu.VMEM((1, N), jnp.float32),   # carried distances, row layout
            pltpu.VMEM((N, 1), jnp.float32),   # carried distances, column layout
        ],
    )

    dist_T, pred_T, neg = pl.pallas_call(
        _bellman_ford_kernel,
        out_shape=(
            jax.ShapeDtypeStruct((padded_iters, N), jnp.float32),
            jax.ShapeDtypeStruct((padded_iters, N), jnp.int32),
            jax.ShapeDtypeStruct((1, 1), jnp.int32),
        ),
        grid_spec=grid_spec,
        compiler_params=pltpu.CompilerParams(
            dimension_semantics=("arbitrary",),
            vmem_limit_bytes=vmem_limit,
        ),
    )(src, adj)

    # Back to the PyTorch (node, iteration) layout required by the module contract.
    distances = dist_T[:N].T
    predecessors = pred_T[:N].T
    has_negative_cycle = neg[0, 0] > 0
    return distances, predecessors, has_negative_cycle


def _reference(adj, src):
    """Pure-numpy transcription of the PyTorch forward pass (for verification)."""
    adj = np.asarray(adj, dtype=np.float32)
    N = adj.shape[0]
    dist = np.full((N, N), np.inf, dtype=np.float32)
    pred = np.zeros((N, N), dtype=np.int32)
    dist[src, 0] = 0.0
    for i in range(1, N):
        for u in range(N):
            for v in range(N):
                w = adj[u, v]
                if dist[u, i - 1] + w < dist[v, i]:
                    dist[v, i] = dist[u, i - 1] + w
                    pred[v, i] = u
    neg = False
    for u in range(N):
        for v in range(N):
            if dist[u, N - 1] + adj[u, v] < dist[v, N - 1]:
                neg = True
                break
        if neg:
            break
    return dist, pred, neg


def _check(adj, src):
    distances, predecessors, has_neg = bellman_ford_layer(adj, src)
    jax.block_until_ready((distances, predecessors, has_neg))
    ref_dist, ref_pred, ref_neg = _reference(np.asarray(adj), src)
    np.testing.assert_allclose(np.asarray(distances), ref_dist, rtol=0, atol=0)
    np.testing.assert_array_equal(np.asarray(predecessors), ref_pred)
    assert bool(has_neg) == ref_neg


if __name__ == "__main__":
    k1, k2 = jax.random.split(jax.random.PRNGKey(0))

    # Test 1: N = 8 (single iteration block), signed weights (negative cycle likely).
    adj1 = jax.random.normal(k1, (8, 8), dtype=jnp.float32)
    _check(adj1, 2)

    # Test 2: N = 13 (partial last iteration block), positive weights (no negative cycle).
    adj2 = jnp.abs(jax.random.normal(k2, (13, 13), dtype=jnp.float32)) + jnp.float32(0.1)
    _check(adj2, 5)

    print("KERNEL_OK")
</pallas_src>

<mosaic_0001>
module attributes {stable_mosaic.version = 11 : i64} {
  func.func @_bellman_ford_kernel(%arg0: i32, %arg1: memref<1xi32, #tpu.memory_space<smem>>, %arg2: memref<8x8xf32, #tpu.memory_space<vmem>>, %arg3: memref<8x8xf32, #tpu.memory_space<vmem>>, %arg4: memref<8x8xi32, #tpu.memory_space<vmem>>, %arg5: memref<1x1xi32, #tpu.memory_space<vmem>>, %arg6: memref<1x8xf32, #tpu.memory_space<vmem>>, %arg7: memref<8x1xf32, #tpu.memory_space<vmem>>) attributes {dimension_semantics = [#tpu.dimension_semantics<arbitrary>], iteration_bounds = array<i64: 1>, scalar_prefetch = 1 : i64, scratch_operands = 2 : i64, tpu.core_type = #tpu.core_type<tc>, window_params = [{pipeline_mode = #tpu.pipeline_mode<synchronous>, transform_indices = @transform_0, window_bounds = array<i64: 8, 8>}, {transform_indices = @transform_1, window_bounds = array<i64: 8, 8>}, {transform_indices = @transform_2, window_bounds = array<i64: 8, 8>}, {pipeline_mode = #tpu.pipeline_mode<synchronous>, transform_indices = @transform_3, window_bounds = array<i64: 1, 1>}]} {
    %c0 = arith.constant 0 : index
    %c0_0 = arith.constant 0 : index
    %0 = vector.load %arg2[%c0, %c0_0] : memref<8x8xf32, #tpu.memory_space<vmem>>, vector<8x8xf32>
    %1 = tpu.iota {dimensions = array<i32: 1>} : vector<1x8xi32>
    %2 = tpu.iota {dimensions = array<i32: 0>} : vector<8x1xi32>
    %3 = tpu.iota {dimensions = array<i32: 0>} : vector<8x8xi32>
    %4 = tpu.iota {dimensions = array<i32: 1>} : vector<8x8xi32>
    %5 = arith.cmpi eq, %3, %4 : vector<8x8xi32>
    %c0_i32 = arith.constant 0 : i32
    %6 = arith.cmpi eq, %arg0, %c0_i32 : i32
    %7 = arith.extui %6 : i1 to i32
    %cst = arith.constant 0x7F800000 : f32
    %c0_i32_1 = arith.constant 0 : i32
    %8 = arith.cmpi ne, %7, %c0_i32_1 : i32
    scf.if %8 {
      %c0_18 = arith.constant 0 : index
      %24 = memref.load %arg1[%c0_18] : memref<1xi32, #tpu.memory_space<smem>>
      %25 = vector.broadcast %24 : i32 to vector<1x8xi32>
      %26 = arith.cmpi eq, %1, %25 : vector<1x8xi32>
      %cst_19 = arith.constant 0.000000e+00 : f32
      %27 = vector.broadcast %cst_19 : f32 to vector<1x8xf32>
      %28 = vector.broadcast %cst : f32 to vector<1x8xf32>
      %29 = arith.select %26, %27, %28 : vector<1x8xi1>, vector<1x8xf32>
      %30 = vector.broadcast %24 : i32 to vector<8x1xi32>
      %31 = arith.cmpi eq, %2, %30 : vector<8x1xi32>
      %cst_20 = arith.constant 0.000000e+00 : f32
      %32 = vector.broadcast %cst_20 : f32 to vector<8x1xf32>
      %33 = vector.broadcast %cst : f32 to vector<8x1xf32>
      %34 = arith.select %31, %32, %33 : vector<8x1xi1>, vector<8x1xf32>
      %c0_21 = arith.constant 0 : index
      %c0_22 = arith.constant 0 : index
      %35 = vector.load %arg3[%c0_21, %c0_22] : memref<8x8xf32, #tpu.memory_space<vmem>>, vector<1x8xf32>
      tpu.vector_store %arg3[%c0_21, %c0_22], %29 {strides = array<i32>} : memref<8x8xf32, #tpu.memory_space<vmem>>, vector<1x8xf32>,
      %c0_i32_23 = arith.constant 0 : i32
      %36 = vector.broadcast %c0_i32_23 : i32 to vector<1x8xi32>
      %c0_24 = arith.constant 0 : index
      %c0_25 = arith.constant 0 : index
      %37 = vector.load %arg4[%c0_24, %c0_25] : memref<8x8xi32, #tpu.memory_space<vmem>>, vector<1x8xi32>
      tpu.vector_store %arg4[%c0_24, %c0_25], %36 {strides = array<i32>} : memref<8x8xi32, #tpu.memory_space<vmem>>, vector<1x8xi32>,
      %c0_26 = arith.constant 0 : index
      %c0_27 = arith.constant 0 : index
      %38 = vector.load %arg6[%c0_26, %c0_27] : memref<1x8xf32, #tpu.memory_space<vmem>>, vector<1x8xf32>
      tpu.vector_store %arg6[%c0_26, %c0_27], %29 {strides = array<i32>} : memref<1x8xf32, #tpu.memory_space<vmem>>, vector<1x8xf32>,
      %c0_28 = arith.constant 0 : index
      %c0_29 = arith.constant 0 : index
      %39 = vector.load %arg7[%c0_28, %c0_29] : memref<8x1xf32, #tpu.memory_space<vmem>>, vector<8x1xf32>
      tpu.vector_store %arg7[%c0_28, %c0_29], %34 {strides = array<i32>} : memref<8x1xf32, #tpu.memory_space<vmem>>, vector<8x1xf32>,
    } else {
    }
    %c0_i32_2 = arith.constant 0 : i32
    %9 = arith.cmpi eq, %arg0, %c0_i32_2 : i32
    %c1_i32 = arith.constant 1 : i32
    %c0_i32_3 = arith.constant 0 : i32
    %10 = arith.select %9, %c1_i32, %c0_i32_3 : i32
    %c8_i32 = arith.constant 8 : i32
    %11 = arith.muli %arg0, %c8_i32 : i32
    %c8_i32_4 = arith.constant 8 : i32
    %12 = arith.subi %c8_i32_4, %11 : i32
    %c8_i32_5 = arith.constant 8 : i32
    %13 = arith.minsi %c8_i32_5, %12 : i32
    %c0_6 = arith.constant 0 : index
    %c0_7 = arith.constant 0 : index
    %14 = vector.load %arg6[%c0_6, %c0_7] : memref<1x8xf32, #tpu.memory_space<vmem>>, vector<1x8xf32>
    %c0_8 = arith.constant 0 : index
    %c0_9 = arith.constant 0 : index
    %15 = vector.load %arg7[%c0_8, %c0_9] : memref<8x1xf32, #tpu.memory_space<vmem>>, vector<8x1xf32>
    %cst_10 = arith.constant 0x7F800000 : f32
    %16 = arith.subi %13, %10 : i32
    %17 = arith.addi %10, %16 : i32
    %c1_i32_11 = arith.constant 1 : i32
    %18:2 = scf.for %arg8 = %10 to %17 step %c1_i32_11 iter_args(%arg9 = %14, %arg10 = %15) -> (vector<1x8xf32>, vector<8x1xf32>)  : i32 {
      %24 = vector.broadcast %arg10 : vector<8x1xf32> to vector<8x8xf32>
      %25 = arith.addf %24, %0 : vector<8x8xf32>
      %cst_18 = arith.constant dense<0x7F800000> : vector<8xf32>
      %26 = vector.multi_reduction <minimumf>, %25, %cst_18 [0] : vector<8x8xf32> to vector<8xf32>
      %27 = vector.shape_cast %26 : vector<8xf32> to vector<1x8xf32>
      %28 = vector.broadcast %27 : vector<1x8xf32> to vector<8x8xf32>
      %29 = arith.cmpf oeq, %25, %28 : vector<8x8xf32>
      %c8_i32_19 = arith.constant 8 : i32
      %30 = vector.broadcast %c8_i32_19 : i32 to vector<8x8xi32>
      %31 = arith.select %29, %3, %30 : vector<8x8xi1>, vector<8x8xi32>
      %cst_20 = arith.constant dense<2147483647> : vector<8xi32>
      %32 = vector.multi_reduction <minsi>, %31, %cst_20 [0] : vector<8x8xi32> to vector<8xi32>
      %33 = vector.shape_cast %32 : vector<8xi32> to vector<1x8xi32>
      %34 = vector.broadcast %cst_10 : f32 to vector<1x8xf32>
      %35 = arith.cmpf olt, %27, %34 : vector<1x8xf32>
      %36 = vector.shape_cast %27 : vector<1x8xf32> to vector<1x8xf32>
      %37 = vector.broadcast %36 : vector<1x8xf32> to vector<8x8xf32>
      %38 = vector.broadcast %cst_10 : f32 to vector<8x8xf32>
      %39 = arith.select %5, %37, %38 : vector<8x8xi1>, vector<8x8xf32>
      %cst_21 = arith.constant dense<0x7F800000> : vector<8xf32>
      %40 = vector.multi_reduction <minimumf>, %39, %cst_21 [1] : vector<8x8xf32> to vector<8xf32>
      %41 = vector.shape_cast %40 : vector<8xf32> to vector<8x1xf32>
      %42 = arith.index_cast %arg8 : i32 to index
      %c0_22 = arith.constant 0 : index
      %43 = vector.load %arg3[%42, %c0_22] : memref<8x8xf32, #tpu.memory_space<vmem>>, vector<1x8xf32>
      tpu.vector_store %arg3[%42, %c0_22], %27 {strides = array<i32>} : memref<8x8xf32, #tpu.memory_space<vmem>>, vector<1x8xf32>,
      %c0_i32_23 = arith.constant 0 : i32
      %44 = vector.broadcast %c0_i32_23 : i32 to vector<1x8xi32>
      %45 = arith.select %35, %33, %44 : vector<1x8xi1>, vector<1x8xi32>
      %46 = arith.index_cast %arg8 : i32 to index
      %c0_24 = arith.constant 0 : index
      %47 = vector.load %arg4[%46, %c0_24] : memref<8x8xi32, #tpu.memory_space<vmem>>, vector<1x8xi32>
      tpu.vector_store %arg4[%46, %c0_24], %45 {strides = array<i32>} : memref<8x8xi32, #tpu.memory_space<vmem>>, vector<1x8xi32>,
      scf.yield %27, %41 : vector<1x8xf32>, vector<8x1xf32>
    }
    %c0_12 = arith.constant 0 : index
    %c0_13 = arith.constant 0 : index
    %19 = vector.load %arg6[%c0_12, %c0_13] : memref<1x8xf32, #tpu.memory_space<vmem>>, vector<1x8xf32>
    tpu.vector_store %arg6[%c0_12, %c0_13], %18#0 {strides = array<i32>} : memref<1x8xf32, #tpu.memory_space<vmem>>, vector<1x8xf32>,
    %c0_14 = arith.constant 0 : index
    %c0_15 = arith.constant 0 : index
    %20 = vector.load %arg7[%c0_14, %c0_15] : memref<8x1xf32, #tpu.memory_space<vmem>>, vector<8x1xf32>
    tpu.vector_store %arg7[%c0_14, %c0_15], %18#1 {strides = array<i32>} : memref<8x1xf32, #tpu.memory_space<vmem>>, vector<8x1xf32>,
    %c0_i32_16 = arith.constant 0 : i32
    %21 = arith.cmpi eq, %arg0, %c0_i32_16 : i32
    %22 = arith.extui %21 : i1 to i32
    %c0_i32_17 = arith.constant 0 : i32
    %23 = arith.cmpi ne, %22, %c0_i32_17 : i32
    scf.if %23 {
      %24 = vector.broadcast %18#1 : vector<8x1xf32> to vector<8x8xf32>
      %25 = arith.addf %24, %0 : vector<8x8xf32>
      %26 = vector.broadcast %18#0 : vector<1x8xf32> to vector<8x8xf32>
      %27 = arith.cmpf olt, %25, %26 : vector<8x8xf32>
      %28 = arith.extui %27 : vector<8x8xi1> to vector<8x8xi32>
      %cst_18 = arith.constant dense<-2147483648> : vector<8xi32>
      %29 = vector.multi_reduction <maxsi>, %28, %cst_18 [1] : vector<8x8xi32> to vector<8xi32>
      %30 = vector.shape_cast %29 : vector<8xi32> to vector<8x1xi32>
      %cst_19 = arith.constant dense<-2147483648> : vector<1xi32>
      %31 = vector.multi_reduction <maxsi>, %30, %cst_19 [0] : vector<8x1xi32> to vector<1xi32>
      %32 = vector.shape_cast %31 : vector<1xi32> to vector<1x1xi32>
      %c0_20 = arith.constant 0 : index
      %c0_21 = arith.constant 0 : index
      %33 = vector.load %arg5[%c0_20, %c0_21] : memref<1x1xi32, #tpu.memory_space<vmem>>, vector<1x1xi32>
      tpu.vector_store %arg5[%c0_20, %c0_21], %32 {strides = array<i32>} : memref<1x1xi32, #tpu.memory_space<vmem>>, vector<1x1xi32>,
    } else {
    }
    return
  }
  func.func @transform_0(%arg0: i32, %arg1: memref<1xi32, #tpu.memory_space<smem>>) -> (i32, i32) {
    %c0_i32 = arith.constant 0 : i32
    %c0_i32_0 = arith.constant 0 : i32
    %c0_i32_1 = arith.constant 0 : i32
    return %c0_i32, %c0_i32_0 : i32, i32
  }
  func.func @transform_1(%arg0: i32, %arg1: memref<1xi32, #tpu.memory_space<smem>>) -> (i32, i32) {
    %c0_i32 = arith.constant 0 : i32
    %c0_i32_0 = arith.constant 0 : i32
    return %arg0, %c0_i32 : i32, i32
  }
  func.func @transform_2(%arg0: i32, %arg1: memref<1xi32, #tpu.memory_space<smem>>) -> (i32, i32) {
    %c0_i32 = arith.constant 0 : i32
    %c0_i32_0 = arith.constant 0 : i32
    return %arg0, %c0_i32 : i32, i32
  }
  func.func @transform_3(%arg0: i32, %arg1: memref<1xi32, #tpu.memory_space<smem>>) -> (i32, i32) {
    %c0_i32 = arith.constant 0 : i32
    %c0_i32_0 = arith.constant 0 : i32
    %c0_i32_1 = arith.constant 0 : i32
    return %c0_i32, %c0_i32_0 : i32, i32
  }
}

</mosaic_0001>

<bundles_post_ra>
// kernel: tpu_custom_call.1
= control target key start
LH: loop header
LB: loop body
LE: loop exit
PB: predicated region body
PF: predicated region fallthrough
CT: control target
= control target key end

     0   :  { %11 = vsyncpa [#allocation7], 0  ;;  %s451_s0 = inlined_call_operand.<no memory space> [shape: s32[1], index: 0, kind: input, shape index: {}]   ;;  %s452_s1 = inlined_call_operand.hbm [shape: f32[8,8], index: 1, kind: input, shape index: {}]   ;;  %s453_s2 = inlined_call_operand.hbm [shape: f32[8,8], index: 2, kind: output, shape index: {0}]   ;;  %s454_s3 = inlined_call_operand.hbm [shape: s32[8,8], index: 3, kind: output, shape index: {1}]   ;;  %s455_s4 = inlined_call_operand.hbm [shape: s32[1,1], index: 4, kind: output, shape index: {2}]  }
   0x1   :  { %12 = vsyncpa [#allocation8], 0 }
   0x2   :  { %13 = vsyncpa [#allocation11], 0  ;;  %s337_s15 = smov [#allocation6]   ;;  %s227_s19 = scalar_lea.hbm %s452_s1, 128 }
   0x3   :  { %s20_s16 = sshll.u32 %s337_s15, 4  ;;  %p228_p0 = scmp.ne.s32.totalorder %s452_s1, %s227_s19  ;;  %s21_s16 = int_to_ptr.vmem [resolvable:$true] %s20_s16 }
   0x4   :  { %p231_p1 = scmp.lt.u32.totalorder %s227_s19, %s452_s1 }
   0x6   :  { %p233_p2 = pnand %p231_p1, %p228_p0 }
   0x8   :  { %236 = shalt.err (!%p233_p2)
}
   0x9   :  { %s237_s24 = scalar_lea.vmem %s21_s16, 128  ;;  %p242_p4 = scmp.lt.s32.totalorder %s21_s16, %s21_s16 }
   0xa   :  { %p238_p3 = scmp.ne.s32.totalorder %s21_s16, %s237_s24  ;;  %p243_p5 = scmp.lt.s32.totalorder %s237_s24, %s237_s24 }
   0xc   :  { %p244_p6 = por %p243_p5, %p242_p4 }
   0xe   :  { %p245_p7 = pnand %p244_p6, %p238_p3 }
  0x10   :  { %248 = shalt.err (!%p245_p7)
}
  0x11   :  { %23 = dma.hbm_to_vmem [thread:$0]  %s452_s1, 128, %s21_s16, [#allocation7]  }
  0x12   :  { %323 = dma.done.wait [#allocation7], 128  }
  0x13   :  { %324 = vsyncadd [#allocation7], 4294967168  ;;  %v28_v0 = vlaneseq  ;;  %v38_v1 = vstv %s451_s0  ;;  %vm43_vm0 = vcmask 57344   ;;  %v338_v4 = vmov 0   ;;  %v27_v8 = vld [vmem:[#allocation6] sm:$0xff]  ;;  %s392_s0 = smov 1  }
  0x14   :  { %45 = vst.msk [vmem:[#allocation10] sm:$0x1] %vm43_vm0, %v338_v4  ;;  %vm47_vm1 = vcmask 7168   ;;  %v339_v5 = vmov inf  }
  0x15   :  { %v384_v2 = vshrl.u32 %v28_v0, 7  ;;  %v29_v3 = vand.u32 127, %v28_v0 }
  0x17   :  { %vm41_vm2 = vcmp.eq.s32.totalorder %v384_v2, %v38_v1  ;;  %vm32_vm3 = vcmp.eq.s32.totalorder %v384_v2, %v29_v3  ;;  %vm39_vm4 = vcmp.eq.s32.totalorder %v29_v3, %v38_v1 }
  0x18   :  { %v42_v6 = vsel %vm41_vm2, 0.0, %v339_v5  ;;  %v40_v7 = vsel %vm39_vm4, 0.0, %v339_v5 }
  0x19   :  { %48 = vst.msk [vmem:[#allocation3] sm:$0xff] %vm47_vm1, %v42_v6 }
  0x1a   :  { %44 = vst.msk [vmem:[#allocation9] sm:$0x1] %vm43_vm0, %v40_v7 }
  0x20   :  { %v55_v9 = vld [vmem:[#allocation3] sm:$0xff]  }
  0x21   :  { %v329_v10 = vmov %v55_v9  }
  0x22 LB: > { %v340_v11 = vmov 0   ;;  %vm70_vm5 = vcmask 64512   ;;  %s95_s1 = scalar_lea.vmem [#allocation9], %s335_s0  ;;  %s99_s29 = scalar_lea.vmem [#allocation10], %s335_s0  ;;  %s335_s0 = sphi %s392_s0, %s59_s0   ;;  %v331_v10 = vphi %v329_v10, %v330_v10  }
  0x23   : > { %225 = vset.pattern.permute.xlu0 %v340_v11  ;;  %s59_s0 = sadd.s32 1, %s335_s0  }
  0x24   : > { %66 = vperm.xlu0 %225, %v331_v10   ;;  %p58_p8 = scmp.ge.s32.totalorder %s59_s0, 8 }
  0x25   :  { %v116_v33 = vsub.s32 (%p58_p8), 0, %v384_v2  ;;  %s341_s30 = smov (%p58_p8), [#allocation10]   ;;  %s342_s6 = smov (%p58_p8), [#allocation9]  }
  0x26   :  { %s163_s5 = sshll.u32 (%p58_p8), %s341_s30, 4  ;;  %s153_s7 = sshll.u32 (%p58_p8), %s342_s6, 4  ;;  %s164_s5 = int_to_ptr.vmem [resolvable:$true] %s163_s5  ;;  %s154_s7 = int_to_ptr.vmem [resolvable:$true] %s153_s7 }
  0x27   :  { %s249_s8 = scalar_lea.vmem (%p58_p8), %s164_s5, 128  ;;  %p254_p10 = scmp.lt.s32.totalorder (%p58_p8), %s164_s5, %s164_s5 }
  0x28   :  { %226 = vset.pattern.permute.xlu0 (%p58_p8), %v338_v4  ;;  %p250_p9 = scmp.ne.s32.totalorder (%p58_p8), %s164_s5, %s249_s8  ;;  %p255_p11 = scmp.lt.s32.totalorder (%p58_p8), %s249_s8, %s249_s8 }
  0x2a   :  { %p256_p12 = por (%p58_p8), %p255_p11, %p254_p10 }
  0x2c   :  { %p257_p13 = pnand (%p58_p8), %p256_p12, %p250_p9 }
  0xa3   : > { %v67_v12 = vpop.permute.xlu0 %66 }
  0xa4   : > { %v69_v13 = vadd.f32 %v67_v12, %v27_v8 }
  0xa6   : > { %v71_v14 = vsel %vm70_vm5, %v69_v13, inf }
  0xa7   : > { %v72_v15 = vrot.slane %v71_v14, 4 }
  0xa9   : > { %v73_v16 = vmin.f32 %v71_v14, %v72_v15 }
  0xab   : > { %v74_v17 = vrot.slane %v73_v16, 2 }
  0xad   : > { %v75_v18 = vmin.f32 %v73_v16, %v74_v17 }
  0xaf   : > { %v76_v19 = vrot.slane %v75_v18, 1 }
  0xb1   : > { %v77_v20 = vmin.f32 %v75_v18, %v76_v19 }
  0xb3   : > { %vm78_vm6 = vcmp.eq.f32.partialorder %v69_v13, %v77_v20  ;;  %97 = vst.msk [vmem:[%s95_s1] sm:$0x1] %vm43_vm0, %v77_v20  ;;  %v91_v21 = vsel %vm32_vm3, %v77_v20, inf  ;;  %vm90_vm10 = vcmp.lt.f32.partialorder %v77_v20, inf  ;;  %v117_v34 = vrot.slane (%p58_p8), %v77_v20, %v116_v33 }
  0xb4   : > { %v79_v22 = vsel %vm78_vm6, %v384_v2, 8  ;;  %v92_v23 = vsel %vm70_vm5, %v91_v21, inf }
  0xb5   : > { %v80_v24 = vsel %vm70_vm5, %v79_v22, 2147483647  ;;  %93 = vmin.xlane.f32.xlu0 %v92_v23 }
  0xb6   : > { %v81_v25 = vrot.slane %v80_v24, 4 }
  0xb8   : > { %vm82_vm7 = vcmp.lt.s32.totalorder %v80_v24, %v81_v25 }
  0xb9   : > { %v83_v26 = vsel %vm82_vm7, %v80_v24, %v81_v25 }
  0xba   : > { %v84_v27 = vrot.slane %v83_v26, 2 }
  0xbc   : > { %vm85_vm8 = vcmp.lt.s32.totalorder %v83_v26, %v84_v27 }
  0xbd   : > { %v86_v28 = vsel %vm85_vm8, %v83_v26, %v84_v27 }
  0xbe   : > { %v87_v29 = vrot.slane %v86_v28, 1 }
  0xc0   : > { %vm88_vm9 = vcmp.lt.s32.totalorder %v86_v28, %v87_v29 }
  0xc1   : > { %v89_v30 = vsel %vm88_vm9, %v86_v28, %v87_v29 }
  0xc2   : > { %v98_v31 = vsel %vm90_vm10, %v89_v30, 0 }
  0xc3   : > { %100 = vst.msk [vmem:[%s99_s29] sm:$0x1] %vm43_vm0, %v98_v31 }
 0x13d   :  { %61 = sbr.rel (!%p58_p8) target bundleno = 34 (0x22), region = 61 }
 0x142   : > { %v94_v32 = vpop.xlane.xlu0 %93  }
 0x143   : > { %v330_v10 = vmov %v94_v32   ;;  %104 = vst.msk [vmem:[#allocation3] sm:$0xff] (%p58_p8), %vm47_vm1, %v94_v32  ;;  %110 = vperm.xlu0 (%p58_p8), %226, %v94_v32  }
 0x1c2   :  { %v111_v35 = vpop.permute.xlu0 %110 }
 0x1c3   :  { %v113_v36 = vadd.f32 %v111_v35, %v27_v8 }
 0x1c5   :  { %vm118_vm11 = vcmp.lt.f32.partialorder %v113_v36, %v117_v34 }
 0x1c6   :  { %v119_v37 = vsel %vm118_vm11, 1, %v338_v4 }
 0x1c7   :  { %v121_v38 = vsel %vm70_vm5, %v119_v37, 2147483648 }
 0x1c8   :  { %v123_v39 = vshra.s32 %v121_v38, 16  ;;  %v122_v41 = vand.u32 65535, %v121_v38 }
 0x1ca   :  { %v125_v40 = vcvt.s32.f32 %v123_v39  ;;  %v124_v43 = vcvt.s32.f32 %v122_v41 }
 0x1cc   :  { %126 = vmax.xlane.f32.xlu0 %v125_v40 }
 0x259   :  { %v127_v42 = vpop.xlane.xlu0 %126 }
 0x25a   :  { %vm128_vm12 = vcmp.eq.f32.partialorder %v125_v40, %v127_v42 }
 0x25b   :  { %v129_v44 = vsel %vm128_vm12, %v124_v43, -inf }
 0x25c   :  { %130 = vmax.xlane.f32.xlu1 %v129_v44 }
 0x25d   :  { %260 = shalt.err (!%p257_p13)
}
 0x25e   :  { %s261_s11 = scalar_lea.hbm %s454_s3, 128 }
 0x25f   :  { %p262_p0 = scmp.ne.s32.totalorder %s454_s3, %s261_s11  ;;  %p265_p1 = scmp.lt.u32.totalorder %s261_s11, %s454_s3 }
 0x261   :  { %p267_p2 = pnand %p265_p1, %p262_p0 }
 0x263   :  { %270 = shalt.err (!%p267_p2)
}
 0x264   :  { %166 = dma.vmem_to_hbm [thread:$0]  %s164_s5, 128, %s454_s3, [#allocation11]  }
 0x265   :  { %s271_s18 = scalar_lea.vmem %s154_s7, 128  ;;  %p276_p4 = scmp.lt.s32.totalorder %s154_s7, %s154_s7 }
 0x266   :  { %p272_p3 = scmp.ne.s32.totalorder %s154_s7, %s271_s18  ;;  %p277_p5 = scmp.lt.s32.totalorder %s271_s18, %s271_s18 }
 0x268   :  { %p278_p6 = por %p277_p5, %p276_p4 }
 0x26a   :  { %p279_p7 = pnand %p278_p6, %p272_p3 }
 0x26c   :  { %282 = shalt.err (!%p279_p7)
}
 0x26d   :  { %s283_s21 = scalar_lea.hbm %s453_s2, 128 }
 0x26e   :  { %p284_p8 = scmp.ne.s32.totalorder %s453_s2, %s283_s21  ;;  %p287_p9 = scmp.lt.u32.totalorder %s283_s21, %s453_s2 }
 0x270   :  { %p289_p10 = pnand %p287_p9, %p284_p8 }
 0x272   :  { %292 = shalt.err (!%p289_p10)
}
 0x273   :  { %156 = dma.vmem_to_hbm [thread:$0]  %s154_s7, 128, %s453_s2, [#allocation8]   ;;  %v133_v45 = vcvt.f32.s32 %v127_v42  ;;  %vm145_vm15 = vcmask 0  }
 0x274   :  { %s343_s27 = smov [#allocation12]  }
 0x275   :  { %v134_v47 = vshll.u32 %v133_v45, 16  ;;  %s173_s28 = sshll.u32 %s343_s27, 4  ;;  %s174_s28 = int_to_ptr.vmem [resolvable:$true] %s173_s28 }
 0x276   :  { %s293_s2 = scalar_lea.vmem %s174_s28, 16  ;;  %s297_s0 = scalar_lea.vmem %s174_s28, 32 }
 0x277   :  { %p294_p11 = scmp.ne.s32.totalorder %s174_s28, %s293_s2  ;;  %p298_p12 = scmp.lt.s32.totalorder %s174_s28, %s174_s28 }
 0x278   :  { %p299_p13 = scmp.lt.s32.totalorder %s297_s0, %s293_s2 }
 0x27a   :  { %p300_p0 = por %p299_p13, %p298_p12 }
 0x27c   :  { %p301_p1 = pnand %p300_p0, %p294_p11 }
 0x2e9   :  { %v131_v46 = vpop.xlane.xlu1 %130 }
 0x2ea   :  { %v132_v48 = vcvt.f32.s32 %v131_v46 }
 0x2ec   :  { %v135_v49 = vadd.s32 %v134_v47, %v132_v48 }
 0x2ee   :  { %v136_v50 = vrot.slane %v135_v49, 4 }
 0x2f0   :  { %vm137_vm13 = vcmp.gt.s32.totalorder %v135_v49, %v136_v50 }
 0x2f1   :  { %v138_v51 = vsel %vm137_vm13, %v135_v49, %v136_v50 }
 0x2f2   :  { %v139_v52 = vrot.slane %v138_v51, 2 }
 0x2f4   :  { %vm140_vm14 = vcmp.gt.s32.totalorder %v138_v51, %v139_v52 }
 0x2f5   :  { %v141_v53 = vsel %vm140_vm14, %v138_v51, %v139_v52 }
 0x2f6   :  { %v142_v54 = vrot.slane %v141_v53, 1 }
 0x2f8   :  { %vm143_vm0 = vcmp.gt.s32.totalorder %v141_v53, %v142_v54 }
 0x2f9   :  { %v144_v55 = vsel %vm143_vm0, %v141_v53, %v142_v54 }
 0x2fa   :  { %146 = vst.msk [vmem:[#allocation12] sm:$0x1] %vm145_vm15, %v144_v55 }
 0x2fb   :  { %304 = shalt.err (!%p301_p1)
}
 0x2fc   :  { %s305_s30 = scalar_lea.hbm %s455_s4, 16 }
 0x2fd   :  { %p306_p2 = scmp.ne.s32.totalorder %s455_s4, %s305_s30  ;;  %p309_p3 = scmp.lt.u32.totalorder %s305_s30, %s455_s4 }
 0x2ff   :  { %p311_p4 = pnand %p309_p3, %p306_p2 }
 0x301   :  { %314 = shalt.err (!%p311_p4)
}
 0x302   :  { %176 = dma.vmem_to_hbm [thread:$0]  %s174_s28, 16, %s455_s4, [#allocation11]  }
 0x303   :  { %325 = dma.done.wait [#allocation8], 128  }
 0x304   :  { %326 = vsyncadd [#allocation8], 4294967168 }
 0x305   :  { %327 = dma.done.wait [#allocation11], 144  }
 0x306   :  { %328 = vsyncadd [#allocation11], 4294967152 }
 0x307   :  { %186 = vsyncpa [#allocation7], 1 }
 0x308   :  { %187 = vsyncpa [#allocation8], 1 }
 0x309   :  { %188 = vsyncpa [#allocation11], 1 }

</bundles_post_ra>
